<compile_context>
chip_gen: v6e
topology: v6e:2x2x1
jax: 0.10.0
libtpu: 0.0.40
codegen_flags: <defaults>
</compile_context>

<pallas_src>
import jax
import jax.numpy as jnp
from jax.experimental import pallas as pl
from jax.experimental.pallas import tpu as pltpu

_LANES = 128
# 4096 x 128 f32 = 2 MiB per block -> ~8 MiB resident with double-buffered
# input + output; under the 16 MiB scoped default on v5e and 32 MiB on v6e/v7x.
_MAX_TILE_ROWS = 4096


def _discriminator_kernel(x_ref, o_ref):
    # sigmoid(relu(relu(x))) == sigmoid(relu(x)).
    # Single EUP op: sigmoid(y) = 0.5 * tanh(0.5 * y) + 0.5.
    y = jnp.maximum(x_ref[...].astype(jnp.float32), 0.0)
    o_ref[...] = (0.5 * jnp.tanh(0.5 * y) + 0.5).astype(o_ref.dtype)


def _round_up(x, m):
    return ((x + m - 1) // m) * m


def discriminator_forward(x):
    """Forward of Discriminator: sigmoid(relu(x)), input shape preserved."""
    orig_shape = x.shape
    dtype = x.dtype
    n = x.size
    if n == 0:
        return x

    itemsize = jnp.dtype(dtype).itemsize
    # Sublane packing minimum: 8 rows for 32-bit, 16 for bf16, 32 for int8/fp8.
    align = max(8, 32 // max(1, itemsize))

    rows = pl.cdiv(n, _LANES)
    rows_aligned = _round_up(rows, align)
    padded_n = rows_aligned * _LANES
    needs_pad = padded_n != n

    x_flat = jnp.ravel(x)
    if needs_pad:
        x_flat = jnp.pad(x_flat, (0, padded_n - n))
    x2d = x_flat.reshape(rows_aligned, _LANES)

    # Aim for >= 2 grid steps (both TensorCores on v7x) while capping the block
    # at _MAX_TILE_ROWS; the final block may be partial (Pallas masks it).
    half = pl.cdiv(rows_aligned, 2)
    tile_rows = min(_MAX_TILE_ROWS, max(align, _round_up(half, align)))
    grid = (pl.cdiv(rows_aligned, tile_rows),)

    out2d = pl.pallas_call(
        _discriminator_kernel,
        out_shape=jax.ShapeDtypeStruct((rows_aligned, _LANES), dtype),
        grid_spec=pltpu.PrefetchScalarGridSpec(
            num_scalar_prefetch=0,
            grid=grid,
            in_specs=[pl.BlockSpec((tile_rows, _LANES), lambda i: (i, 0))],
            out_specs=pl.BlockSpec((tile_rows, _LANES), lambda i: (i, 0)),
        ),
        compiler_params=pltpu.CompilerParams(
            dimension_semantics=("parallel",),
        ),
        cost_estimate=pl.CostEstimate(
            flops=3 * padded_n,                       # max + mul + add
            transcendentals=padded_n,                 # one tanh per element
            bytes_accessed=2 * padded_n * itemsize,
        ),
    )(x2d)

    if needs_pad:
        return out2d.reshape(-1)[:n].reshape(orig_shape)
    return out2d.reshape(orig_shape)


if __name__ == "__main__":
    in_features = 2
    batch = 8

    key = jax.random.PRNGKey(0)
    x = jax.random.normal(key, (batch, in_features), dtype=jnp.float32)

    out = jax.block_until_ready(discriminator_forward(x))

    # Reference: sigmoid(relu(relu(x))) == sigmoid(relu(x))
    ref = jax.nn.sigmoid(jnp.maximum(x, 0.0))
    assert out.shape == x.shape
    assert jnp.allclose(out, ref, atol=1e-5, rtol=1e-5)

    # Non-aligned larger size: exercises padding + partial final block.
    x_big = jax.random.normal(jax.random.PRNGKey(1), (4097, 3), dtype=jnp.float32)
    out_big = jax.block_until_ready(discriminator_forward(x_big))
    ref_big = jax.nn.sigmoid(jnp.maximum(x_big, 0.0))
    assert out_big.shape == x_big.shape
    assert jnp.allclose(out_big, ref_big, atol=1e-5, rtol=1e-5)

    # Aligned size: exercises the no-pad / no-slice fast path and a >=2-step grid.
    x_al = jax.random.normal(jax.random.PRNGKey(2), (512, 256), dtype=jnp.float32)
    out_al = jax.block_until_ready(discriminator_forward(x_al))
    ref_al = jax.nn.sigmoid(jnp.maximum(x_al, 0.0))
    assert out_al.shape == x_al.shape
    assert jnp.allclose(out_al, ref_al, atol=1e-5, rtol=1e-5)

    print("KERNEL_OK")
</pallas_src>

<mosaic_0001>
module attributes {stable_mosaic.version = 11 : i64} {
  func.func @_discriminator_kernel(%arg0: i32, %arg1: memref<8x128xf32, #tpu.memory_space<vmem>>, %arg2: memref<8x128xf32, #tpu.memory_space<vmem>>) attributes {dimension_semantics = [#tpu.dimension_semantics<parallel>], iteration_bounds = array<i64: 1>, scalar_prefetch = 0 : i64, scratch_operands = 0 : i64, tpu.core_type = #tpu.core_type<tc>, window_params = [{transform_indices = @transform_0, window_bounds = array<i64: 8, 128>}, {transform_indices = @transform_1, window_bounds = array<i64: 8, 128>}]} {
    %c0 = arith.constant 0 : index
    %c0_0 = arith.constant 0 : index
    %0 = vector.load %arg1[%c0, %c0_0] : memref<8x128xf32, #tpu.memory_space<vmem>>, vector<8x128xf32>
    %cst = arith.constant 0.000000e+00 : f32
    %1 = vector.broadcast %cst : f32 to vector<8x128xf32>
    %2 = arith.maximumf %0, %1 : vector<8x128xf32>
    %cst_1 = arith.constant 5.000000e-01 : f32
    %3 = vector.broadcast %cst_1 : f32 to vector<8x128xf32>
    %4 = arith.mulf %3, %2 : vector<8x128xf32>
    %5 = math.tanh %4 : vector<8x128xf32>
    %cst_2 = arith.constant 5.000000e-01 : f32
    %6 = vector.broadcast %cst_2 : f32 to vector<8x128xf32>
    %7 = arith.mulf %6, %5 : vector<8x128xf32>
    %cst_3 = arith.constant 5.000000e-01 : f32
    %8 = vector.broadcast %cst_3 : f32 to vector<8x128xf32>
    %9 = arith.addf %7, %8 : vector<8x128xf32>
    %c0_4 = arith.constant 0 : index
    %c0_5 = arith.constant 0 : index
    %10 = vector.load %arg2[%c0_4, %c0_5] : memref<8x128xf32, #tpu.memory_space<vmem>>, vector<8x128xf32>
    tpu.vector_store %arg2[%c0_4, %c0_5], %9 {strides = array<i32>} : memref<8x128xf32, #tpu.memory_space<vmem>>, vector<8x128xf32>,
    return
  }
  func.func @transform_0(%arg0: i32) -> (i32, i32) {
    %c0_i32 = arith.constant 0 : i32
    %c0_i32_0 = arith.constant 0 : i32
    return %arg0, %c0_i32 : i32, i32
  }
  func.func @transform_1(%arg0: i32) -> (i32, i32) {
    %c0_i32 = arith.constant 0 : i32
    %c0_i32_0 = arith.constant 0 : i32
    return %arg0, %c0_i32 : i32, i32
  }
}

</mosaic_0001>

<bundles_post_ra>
// kernel: tpu_custom_call.1
= control target key start
LH: loop header
LB: loop body
LE: loop exit
PB: predicated region body
PF: predicated region fallthrough
CT: control target
= control target key end

     0   :  { %6 = vsyncpa [#allocation3], 0  ;;  %s109_s0 = inlined_call_operand.hbm [shape: f32[8,128], index: 0, kind: input, shape index: {}]   ;;  %s110_s1 = inlined_call_operand.hbm [shape: f32[8,128], index: 1, kind: output, shape index: {}]  }
   0x1   :  { %7 = vsyncpa [#allocation4], 0  ;;  %s91_s6 = smov [#allocation2]  }
   0x2   :  { %s14_s7 = sshll.u32 %s91_s6, 4  ;;  %s15_s7 = int_to_ptr.vmem [resolvable:$true] %s14_s7 }
   0x3   :  { %s55_s8 = scalar_lea.vmem %s15_s7, 128  ;;  %p60_p1 = scmp.lt.s32.totalorder %s15_s7, %s15_s7 }
   0x4   :  { %p56_p0 = scmp.ne.s32.totalorder %s15_s7, %s55_s8  ;;  %p61_p2 = scmp.lt.s32.totalorder %s55_s8, %s55_s8 }
   0x6   :  { %p62_p3 = por %p61_p2, %p60_p1 }
   0x8   :  { %p63_p4 = pnand %p62_p3, %p56_p0 }
   0xa   :  { %66 = shalt.err (!%p63_p4)
}
   0xb   :  { %17 = dma.hbm_to_vmem [thread:$0]  %s109_s0, 128, %s15_s7, [#allocation3]  }
   0xc   :  { %87 = dma.done.wait [#allocation3], 128  }
   0xd   :  { %88 = vsyncadd [#allocation3], 4294967168  ;;  %v21_v0 = vld [vmem:[#allocation2] sm:$0xff]  ;;  %s92_s11 = smov [#allocation5]  }
   0xe   :  { %v22_v1 = vmax.f32 %v21_v0, 0.0  ;;  %s34_s12 = sshll.u32 %s92_s11, 4  ;;  %s35_s12 = int_to_ptr.vmem [resolvable:$true] %s34_s12 }
   0xf   :  { %s67_s13 = scalar_lea.vmem %s35_s12, 128  ;;  %p72_p6 = scmp.lt.s32.totalorder %s35_s12, %s35_s12 }
  0x10   :  { %v23_v2 = vmul.f32 0.5, %v22_v1  ;;  %p68_p5 = scmp.ne.s32.totalorder %s35_s12, %s67_s13  ;;  %p73_p7 = scmp.lt.s32.totalorder %s67_s13, %s67_s13 }
  0x12   :  { %45 = vtanh.f32 %v23_v2  ;;  %p74_p8 = por %p73_p7, %p72_p6 }
  0x14   :  { %p75_p9 = pnand %p74_p8, %p68_p5 }
  0x1f   :  { %v46_v3 = vpop.eup %45 }
  0x20   :  { %v25_v4 = vmul.f32 0.5, %v46_v3 }
  0x22   :  { %v26_v5 = vadd.f32 0.5, %v25_v4 }
  0x24   :  { %27 = vst [vmem:[#allocation5] sm:$0xff] %v26_v5 }
  0x25   :  { %78 = shalt.err (!%p75_p9)
}
  0x26   :  { %37 = dma.vmem_to_hbm [thread:$0]  %s35_s12, 128, %s110_s1, [#allocation4]  }
  0x27   :  { %89 = dma.done.wait [#allocation4], 128  }
  0x28   :  { %90 = vsyncadd [#allocation4], 4294967168 }
  0x29   :  { %41 = vsyncpa [#allocation3], 1 }
  0x2a   :  { %42 = vsyncpa [#allocation4], 1 }

</bundles_post_ra>
